<compile_context>
chip_gen: v6e
topology: v6e:2x2x1
jax: 0.10.0
libtpu: 0.0.40
codegen_flags: <defaults>
</compile_context>

<pallas_src>
import functools
import math

import jax
import jax.numpy as jnp
from jax.experimental import pallas as pl
from jax.experimental.pallas import tpu as pltpu

_LANES = 128


def _round_up(n, m):
    return ((n + m - 1) // m) * m


def _cdiv(a, b):
    return -(-a // b)


def _wing_loss_kernel(x_ref, y_ref, partial_ref, *, l1_log_cutoff, inv_epsilon,
                      link_constant, total, tile_r):
    # Elementwise wing transform on a lane-dense tile, then one per-tile
    # reduction into this grid step's own SMEM partial-sum slot.
    diff = x_ref[...].astype(jnp.float32) - y_ref[...].astype(jnp.float32)
    abs_diff = jnp.abs(diff)
    log_val = l1_log_cutoff * jnp.log1p(abs_diff * inv_epsilon)
    res = jnp.where(abs_diff >= l1_log_cutoff, abs_diff - link_constant,
                    log_val)

    i = pl.program_id(0)
    last = pl.num_programs(0) - 1

    @pl.when(i != last)
    def _():
        # Interior tiles are fully valid: unmasked reduce.
        partial_ref[0, 0] = jnp.sum(res)

    @pl.when(i == last)
    def _():
        # Tail tile: mask out rows past the real row count and lane padding
        # (elements whose global flat index >= total).
        ri = jax.lax.broadcasted_iota(jnp.int32, res.shape, 0)
        li = jax.lax.broadcasted_iota(jnp.int32, res.shape, 1)
        gidx = (i * tile_r + ri) * _LANES + li
        partial_ref[0, 0] = jnp.sum(jnp.where(gidx < total, res, 0.0))


def wing_loss(x, y, l1_log_cutoff, epsilon):
    assert x.shape == y.shape
    n_dims = len(x.shape)
    n_samples = x.shape[0] if n_dims > 0 else 1
    n_vertices = x.shape[1] if n_dims > 1 else 1
    link_constant = l1_log_cutoff - l1_log_cutoff * math.log(
        1.0 + l1_log_cutoff / epsilon)

    total = 1
    for d in x.shape:
        total *= d
    total = max(int(total), 1)

    # Lane-dense flatten: (rows, 128) in the input's native dtype.
    rows = _cdiv(total, _LANES)

    # Sublane multiple for packed dtypes (8 f32 / 16 bf16 / 32 int8).
    itemsize = jnp.dtype(x.dtype).itemsize
    sub = max(8, 32 // max(itemsize, 1))

    # Row tile: up to 4096 rows (2 MiB/block for f32).  VMEM budget:
    # 2 inputs x 2 pipeline buffers x 2 MiB + elementwise temporaries, well
    # under the explicit 32 MiB scoped-VMEM limit set below (covers v5e's
    # 16 MiB default too).  When the problem is small, shrink the tile so the
    # parallel grid still gets >= 2 balanced steps (v7x: 2 TCs per chip).
    cap = 4096
    if rows < 2 * sub:
        tile_r = rows  # single full-extent block (allowed even if not %8)
    else:
        half = _round_up(_cdiv(rows, 2), sub)
        tile_r = min(cap, half)
    grid = _cdiv(rows, tile_r)

    lane_total = rows * _LANES

    def _prep(a):
        a = a.reshape(-1)
        if lane_total > total:
            # Only the cheap pad-to-128-lanes; padded contents are ignored by
            # the in-kernel tail mask.
            a = jnp.pad(a, (0, lane_total - total))
        return a.reshape(rows, _LANES)

    x2 = _prep(x)
    y2 = _prep(y)

    kernel = functools.partial(
        _wing_loss_kernel,
        l1_log_cutoff=float(l1_log_cutoff),
        inv_epsilon=1.0 / float(epsilon),
        link_constant=float(link_constant),
        total=total,
        tile_r=int(tile_r),
    )

    partials = pl.pallas_call(
        kernel,
        out_shape=jax.ShapeDtypeStruct((grid, 1), jnp.float32),
        grid_spec=pltpu.PrefetchScalarGridSpec(
            num_scalar_prefetch=0,
            grid=(grid,),
            in_specs=[
                pl.BlockSpec((tile_r, _LANES), lambda i: (i, 0)),
                pl.BlockSpec((tile_r, _LANES), lambda i: (i, 0)),
            ],
            out_specs=pl.BlockSpec((1, 1), lambda i: (i, 0),
                                   memory_space=pltpu.SMEM),
        ),
        compiler_params=pltpu.CompilerParams(
            dimension_semantics=("parallel",),
            vmem_limit_bytes=32 * 1024 * 1024,
        ),
    )(x2, y2)

    return jnp.sum(partials) / jnp.float32(n_samples * n_vertices)


def wing_loss_ref(x, y, l1_log_cutoff, epsilon):
    link_constant = l1_log_cutoff - l1_log_cutoff * math.log(
        1.0 + l1_log_cutoff / epsilon)
    n_samples, n_vertices = x.shape[0], x.shape[1]
    abs_diff = jnp.abs(x.astype(jnp.float32) - y.astype(jnp.float32))
    is_l1 = (abs_diff >= l1_log_cutoff).astype(jnp.float32)
    log_val = l1_log_cutoff * jnp.log(1.0 + abs_diff / epsilon)
    res = is_l1 * (abs_diff - link_constant) + (1.0 - is_l1) * log_val
    return jnp.sum(res) / (n_samples * n_vertices)


if __name__ == "__main__":
    l1_log_cutoff = 10.0
    epsilon = 2.0

    key = jax.random.PRNGKey(0)
    kx, ky = jax.random.split(key)
    # small shapes: batch=2, vertices=8, coord dim=16
    x = jax.random.normal(kx, (2, 8, 16), dtype=jnp.float32) * 20.0
    y = jax.random.normal(ky, (2, 8, 16), dtype=jnp.float32) * 20.0

    out = wing_loss(x, y, l1_log_cutoff, epsilon)
    out = jax.block_until_ready(out)

    ref = wing_loss_ref(x, y, l1_log_cutoff, epsilon)
    assert jnp.allclose(out, ref, rtol=1e-5, atol=1e-5), (out, ref)

    print("KERNEL_OK")
</pallas_src>

<mosaic_0001>
module attributes {stable_mosaic.version = 11 : i64} {
  func.func @_wing_loss_kernel(%arg0: i32, %arg1: memref<2x128xf32, #tpu.memory_space<vmem>>, %arg2: memref<2x128xf32, #tpu.memory_space<vmem>>, %arg3: memref<1x1xf32, #tpu.memory_space<smem>>) attributes {dimension_semantics = [#tpu.dimension_semantics<parallel>], iteration_bounds = array<i64: 1>, scalar_prefetch = 0 : i64, scratch_operands = 0 : i64, tpu.core_type = #tpu.core_type<tc>, window_params = [{transform_indices = @transform_0, window_bounds = array<i64: 2, 128>}, {transform_indices = @transform_1, window_bounds = array<i64: 2, 128>}, {transform_indices = @transform_2, window_bounds = array<i64: 1, 1>}]} {
    %c0 = arith.constant 0 : index
    %c0_0 = arith.constant 0 : index
    %0 = vector.load %arg1[%c0, %c0_0] : memref<2x128xf32, #tpu.memory_space<vmem>>, vector<2x128xf32>
    %c0_1 = arith.constant 0 : index
    %c0_2 = arith.constant 0 : index
    %1 = vector.load %arg2[%c0_1, %c0_2] : memref<2x128xf32, #tpu.memory_space<vmem>>, vector<2x128xf32>
    %2 = arith.subf %0, %1 : vector<2x128xf32>
    %3 = math.absf %2 : vector<2x128xf32>
    %cst = arith.constant 5.000000e-01 : f32
    %4 = vector.broadcast %cst : f32 to vector<2x128xf32>
    %5 = arith.mulf %3, %4 : vector<2x128xf32>
    %6 = math.log1p %5 : vector<2x128xf32>
    %cst_3 = arith.constant 1.000000e+01 : f32
    %7 = vector.broadcast %cst_3 : f32 to vector<2x128xf32>
    %8 = arith.mulf %7, %6 : vector<2x128xf32>
    %cst_4 = arith.constant 1.000000e+01 : f32
    %9 = vector.broadcast %cst_4 : f32 to vector<2x128xf32>
    %10 = arith.cmpf oge, %3, %9 : vector<2x128xf32>
    %cst_5 = arith.constant -7.9175949 : f32
    %11 = vector.broadcast %cst_5 : f32 to vector<2x128xf32>
    %12 = arith.subf %3, %11 : vector<2x128xf32>
    %13 = arith.select %10, %12, %8 : vector<2x128xi1>, vector<2x128xf32>
    %c0_i32 = arith.constant 0 : i32
    %14 = arith.cmpi ne, %arg0, %c0_i32 : i32
    %15 = arith.extui %14 : i1 to i32
    %c0_i32_6 = arith.constant 0 : i32
    %16 = arith.cmpi ne, %15, %c0_i32_6 : i32
    scf.if %16 {
      %20 = vector.shape_cast %13 : vector<2x128xf32> to vector<1x2x128xf32>
      %cst_9 = arith.constant dense<0.000000e+00> : vector<1xf32>
      %21 = vector.multi_reduction <add>, %20, %cst_9 [1, 2] : vector<1x2x128xf32> to vector<1xf32>
      %22 = vector.shape_cast %21 : vector<1xf32> to vector<1x1x1xf32>
      %23 = vector.extract %22[0, 0, 0] : f32 from vector<1x1x1xf32>
      %c0_10 = arith.constant 0 : index
      %c0_11 = arith.constant 0 : index
      %24 = memref.load %arg3[%c0_10, %c0_11] : memref<1x1xf32, #tpu.memory_space<smem>>
      memref.store %23, %arg3[%c0_10, %c0_11] : memref<1x1xf32, #tpu.memory_space<smem>>
    } else {
    }
    %c0_i32_7 = arith.constant 0 : i32
    %17 = arith.cmpi eq, %arg0, %c0_i32_7 : i32
    %18 = arith.extui %17 : i1 to i32
    %c0_i32_8 = arith.constant 0 : i32
    %19 = arith.cmpi ne, %18, %c0_i32_8 : i32
    scf.if %19 {
      %20 = tpu.iota {dimensions = array<i32: 0>} : vector<2x128xi32>
      %21 = tpu.iota {dimensions = array<i32: 1>} : vector<2x128xi32>
      %c2_i32 = arith.constant 2 : i32
      %22 = arith.muli %arg0, %c2_i32 : i32
      %23 = vector.broadcast %22 : i32 to vector<2x128xi32>
      %24 = arith.addi %23, %20 : vector<2x128xi32>
      %c128_i32 = arith.constant 128 : i32
      %25 = vector.broadcast %c128_i32 : i32 to vector<2x128xi32>
      %26 = arith.muli %24, %25 : vector<2x128xi32>
      %27 = arith.addi %26, %21 : vector<2x128xi32>
      %c256_i32 = arith.constant 256 : i32
      %28 = vector.broadcast %c256_i32 : i32 to vector<2x128xi32>
      %29 = arith.cmpi slt, %27, %28 : vector<2x128xi32>
      %cst_9 = arith.constant 0.000000e+00 : f32
      %30 = vector.broadcast %cst_9 : f32 to vector<2x128xf32>
      %31 = arith.select %29, %13, %30 : vector<2x128xi1>, vector<2x128xf32>
      %32 = vector.shape_cast %31 : vector<2x128xf32> to vector<1x2x128xf32>
      %cst_10 = arith.constant dense<0.000000e+00> : vector<1xf32>
      %33 = vector.multi_reduction <add>, %32, %cst_10 [1, 2] : vector<1x2x128xf32> to vector<1xf32>
      %34 = vector.shape_cast %33 : vector<1xf32> to vector<1x1x1xf32>
      %35 = vector.extract %34[0, 0, 0] : f32 from vector<1x1x1xf32>
      %c0_11 = arith.constant 0 : index
      %c0_12 = arith.constant 0 : index
      %36 = memref.load %arg3[%c0_11, %c0_12] : memref<1x1xf32, #tpu.memory_space<smem>>
      memref.store %35, %arg3[%c0_11, %c0_12] : memref<1x1xf32, #tpu.memory_space<smem>>
    } else {
    }
    return
  }
  func.func @transform_0(%arg0: i32) -> (i32, i32) {
    %c0_i32 = arith.constant 0 : i32
    %c0_i32_0 = arith.constant 0 : i32
    return %arg0, %c0_i32 : i32, i32
  }
  func.func @transform_1(%arg0: i32) -> (i32, i32) {
    %c0_i32 = arith.constant 0 : i32
    %c0_i32_0 = arith.constant 0 : i32
    return %arg0, %c0_i32 : i32, i32
  }
  func.func @transform_2(%arg0: i32) -> (i32, i32) {
    %c0_i32 = arith.constant 0 : i32
    %c0_i32_0 = arith.constant 0 : i32
    return %arg0, %c0_i32 : i32, i32
  }
}

</mosaic_0001>

<bundles_post_ra>
// kernel: tpu_custom_call.1
= control target key start
LH: loop header
LB: loop body
LE: loop exit
PB: predicated region body
PF: predicated region fallthrough
CT: control target
= control target key end

     0   :  { %7 = vsyncpa [#allocation3], 0  ;;  %s203_s0 = inlined_call_operand.hbm [shape: f32[2,128], index: 0, kind: input, shape index: {}]   ;;  %s204_s1 = inlined_call_operand.hbm [shape: f32[2,128], index: 1, kind: input, shape index: {}]   ;;  %s205_s2 = inlined_call_operand.hbm [shape: f32[1,1], index: 2, kind: output, shape index: {}]  }
   0x1   :  { %8 = vsyncpa [#allocation6], 0 }
   0x2   :  { %9 = vsyncpa [#allocation4], 0  ;;  %s176_s9 = smov [#allocation2]   ;;  %s177_s11 = smov [#allocation5]  }
   0x3   :  { %s16_s10 = sshll.u32 %s176_s9, 4  ;;  %s26_s12 = sshll.u32 %s177_s11, 4  ;;  %s17_s10 = int_to_ptr.vmem [resolvable:$true] %s16_s10  ;;  %s27_s12 = int_to_ptr.vmem [resolvable:$true] %s26_s12 }
   0x4   :  { %s130_s13 = scalar_lea.vmem %s17_s10, 32  ;;  %p135_p1 = scmp.lt.s32.totalorder %s17_s10, %s17_s10 }
   0x5   :  { %p131_p0 = scmp.ne.s32.totalorder %s17_s10, %s130_s13  ;;  %p136_p2 = scmp.lt.s32.totalorder %s130_s13, %s130_s13 }
   0x7   :  { %p137_p3 = por %p136_p2, %p135_p1 }
   0x9   :  { %p138_p4 = pnand %p137_p3, %p131_p0 }
   0xb   :  { %141 = shalt.err (!%p138_p4)
}
   0xc   :  { %19 = dma.hbm_to_vmem [thread:$0]  %s203_s0, 32, %s17_s10, [#allocation3]  }
   0xd   :  { %s150_s16 = scalar_lea.vmem %s27_s12, 32  ;;  %p155_p6 = scmp.lt.s32.totalorder %s27_s12, %s27_s12 }
   0xe   :  { %p151_p5 = scmp.ne.s32.totalorder %s27_s12, %s150_s16  ;;  %p156_p7 = scmp.lt.s32.totalorder %s150_s16, %s150_s16 }
  0x10   :  { %p157_p8 = por %p156_p7, %p155_p6 }
  0x12   :  { %p158_p9 = pnand %p157_p8, %p151_p5 }
  0x14   :  { %161 = shalt.err (!%p158_p9)
}
  0x15   :  { %29 = dma.hbm_to_vmem [thread:$0]  %s204_s1, 32, %s27_s12, [#allocation6]  }
  0x16   :  { %170 = dma.done.wait [#allocation3], 32  }
  0x17   :  { %171 = vsyncadd [#allocation3], 4294967264 }
  0x18   :  { %172 = dma.done.wait [#allocation6], 32  }
  0x19   :  { %173 = vsyncadd [#allocation6], 4294967264  ;;  %v36_v0 = vld [vmem:[#allocation2] sm:$0x3]  ;;  %v37_v1 = vld [vmem:[#allocation5] sm:$0x3]  ;;  %v75_v6 = vlaneseq }
  0x1a   :  { %v38_v2 = vsub.f32 %v36_v0, %v37_v1  ;;  %vm86_vm3 = vcmask 1041408   ;;  %s178_s1 = smov [#allocation7]  }
  0x1b   :  { %v76_v8 = vshrl.u32 %v75_v6, 7  ;;  %v78_v11 = vand.u32 127, %v75_v6 }
  0x1c   :  { %v39_v3 = vand.u32 2147483647, %v38_v2 }
  0x1d   :  { %v82_v12 = vmul.u32 128, %v76_v8 }
  0x1e   :  { %v40_v4 = vmul.f32 0.5, %v39_v3  ;;  %v114_v17 = vadd.f32 7.917595, %v39_v3  ;;  %vm51_vm1 = vcmp.ge.f32.partialorder %v39_v3, 10.0 }
  0x1f   :  { %v83_v15 = vadd.s32 %v82_v12, %v78_v11 }
  0x20   :  { %v41_v5 = vadd.f32 1.0, %v40_v4  ;;  %v44_v7 = vmul.f32 -0.5, %v40_v4  ;;  %v47_v10 = vand.u32 2147483647, %v40_v4 }
  0x21   :  { %vm84_vm2 = vcmp.lt.s32.totalorder %v83_v15, 256 }
  0x22   :  { %120 = vlog2.f32 %v41_v5  ;;  %v45_v9 = vadd.f32 1.0, %v44_v7  ;;  %vm48_vm0 = vcmp.lt.f32.partialorder %v47_v10, 0.0004427343 }
  0x24   :  { %v46_v13 = vmul.f32 %v45_v9, %v40_v4 }
  0x2f   :  { %v121_v14 = vpop.eup %120 }
  0x30   :  { %v43_v16 = vmul.f32 0.6931472, %v121_v14 }
  0x32   :  { %v49_v18 = vsel %vm48_vm0, %v46_v13, %v43_v16 }
  0x33   :  { %v50_v19 = vmul.f32 10.0, %v49_v18 }
  0x35   :  { %v53_v20 = vsel %vm51_vm1, %v114_v17, %v50_v19 }
  0x36   :  { %v85_v21 = vsel %vm84_vm2, %v53_v20, 0.0 }
  0x37   :  { %v87_v22 = vsel %vm86_vm3, %v85_v21, 0.0 }
  0x38   :  { %88 = vadd.xlane.f32.xlu0 %v87_v22 }
  0xc1   :  { %v89_v23 = vpop.xlane.xlu0 %88 }
  0xc2   :  { %v90_v24 = vrot.slane %v89_v23, 4 }
  0xc4   :  { %v91_v25 = vadd.f32 %v90_v24, %v89_v23 }
  0xc6   :  { %v92_v26 = vrot.slane %v91_v25, 2 }
  0xc8   :  { %v93_v27 = vadd.f32 %v92_v26, %v91_v25 }
  0xca   :  { %v94_v28 = vrot.slane %v93_v27, 1 }
  0xcc   :  { %v95_v29 = vadd.f32 %v94_v28, %v93_v27 }
  0xce   :  { %115 = vpush %v95_v29 }
  0xff   :  { %s116_s0 = spop %115 }
 0x100   :  { %98 = sst [smem:[#allocation7]] %s116_s0 }
 0x101   :  { %106 = dma.smem_to_hbm %s178_s1, 16, %s205_s2, [#allocation4]  }
 0x102   :  { %174 = dma.done.wait [#allocation4], 16  }
 0x103   :  { %175 = vsyncadd [#allocation4], 4294967280 }
 0x104   :  { %110 = sfence }
 0x105   :  { %111 = vsyncpa [#allocation3], 1 }
 0x106   :  { %112 = vsyncpa [#allocation6], 1 }
 0x107   :  { %113 = vsyncpa [#allocation4], 1 }

</bundles_post_ra>
